<compile_context>
chip_gen: v7x
topology: tpu7x:2x2x1
jax: 0.10.0
libtpu: 0.0.40
codegen_flags: <defaults>
</compile_context>

<pallas_src>
import functools

import jax
import jax.numpy as jnp
from jax import lax
from jax.experimental import pallas as pl
from jax.experimental.pallas import tpu as pltpu

_LN_EPS = 1e-5
_MASK_BIAS = -30000.0          # additive non-edge bias, representable in bf16
_LANE = 128
# Above all scoped defaults (16/32 MiB), below v7x's 64 MiB physical VMEM.
_VMEM_LIMIT = 48 * 1024 * 1024


def _round_up(x, m):
    return (x + m - 1) // m * m


def _layer_norm(x, gamma, beta):
    mu = jnp.mean(x, axis=-1, keepdims=True)
    var = jnp.mean((x - mu) ** 2, axis=-1, keepdims=True)
    return (x - mu) * lax.rsqrt(var + _LN_EPS) * gamma + beta


def _mlp3(x, w1, b1, w2, b2, w3, b3):
    """Linear->ReLU->Linear->ReLU->Linear; bf16 MXU operands, f32 accumulate."""
    h = jnp.dot(x.astype(jnp.bfloat16), w1[...],
                preferred_element_type=jnp.float32) + b1[...]
    h = jnp.maximum(h, 0.0)
    h = jnp.dot(h.astype(jnp.bfloat16), w2[...],
                preferred_element_type=jnp.float32) + b2[...]
    h = jnp.maximum(h, 0.0)
    h = jnp.dot(h.astype(jnp.bfloat16), w3[...],
                preferred_element_type=jnp.float32) + b3[...]
    return h


# ---------------------------------------------------------------------------
# build_mlp kernel (encoder; also standalone decoder if there are no blocks).
# ---------------------------------------------------------------------------
def _mlp_kernel(x_ref, w1, b1, w2, b2, w3, b3, g, bt, o_ref, *, use_layer_norm):
    h = _mlp3(x_ref[...], w1, b1, w2, b2, w3, b3)
    if use_layer_norm:
        h = _layer_norm(h, g[...], bt[...])
    o_ref[...] = h.astype(o_ref.dtype)


def mlp_forward(x, p, *, use_layer_norm, out_dtype, tile_rows=128):
    n, d_in = x.shape
    d_out = p["w3"].shape[1]
    tm = tile_rows if n % tile_rows == 0 else n
    full = lambda a: pl.BlockSpec(a.shape, lambda i: (0, 0))
    kernel = functools.partial(_mlp_kernel, use_layer_norm=use_layer_norm)
    args = (x, p["w1"], p["b1"], p["w2"], p["b2"], p["w3"], p["b3"],
            p["ln_g"], p["ln_b"])
    return pl.pallas_call(
        kernel,
        out_shape=jax.ShapeDtypeStruct((n, d_out), out_dtype),
        grid=(n // tm,),
        in_specs=[pl.BlockSpec((tm, d_in), lambda i: (i, 0))]
                 + [full(a) for a in args[1:]],
        out_specs=pl.BlockSpec((tm, d_out), lambda i: (i, 0)),
        compiler_params=pltpu.CompilerParams(
            dimension_semantics=("parallel",),
            vmem_limit_bytes=_VMEM_LIMIT),
    )(*args)


# ---------------------------------------------------------------------------
# Graph-transformer block: fused K|V projection, per-head edge-masked softmax,
# output projection, residual+LN, 2x-hidden ReLU FFN, residual+LN.
# ---------------------------------------------------------------------------
def _attention_ffn(x_q_ref, x_all_ref, bias_ref,
                   wq, bq, wkv, bkv, wo, bo,
                   ln1g, ln1b, f1w, f1b, f2w, f2b, ln2g, ln2b,
                   attn_scr, *, num_heads):
    xq = x_q_ref[...]                        # (TQ, H) bf16 query-row tile
    xa = x_all_ref[...]                      # (N,  H) bf16 all nodes
    hdim = xq.shape[-1]
    dh = hdim // num_heads
    scale = float(dh) ** -0.5

    # Q for the tile; fused K|V projection (single 2H-wide MXU pass).
    q = jnp.dot(xq, wq[...], preferred_element_type=jnp.float32) + bq[...]
    kv = jnp.dot(xa, wkv[...], preferred_element_type=jnp.float32) + bkv[...]
    qb = (q * scale).astype(jnp.bfloat16)
    kb = kv[:, :hdim].astype(jnp.bfloat16)
    vb = kv[:, hdim:].astype(jnp.bfloat16)

    bias = bias_ref[...].astype(jnp.float32)     # (TQ, N) additive edge mask

    for h in range(num_heads):                   # static, small
        lo, hi = h * dh, (h + 1) * dh
        # q_h @ k_h^T via dot_general (contract on head dim, no XLU transpose)
        s = lax.dot_general(qb[:, lo:hi], kb[:, lo:hi],
                            (((1,), (1,)), ((), ())),
                            preferred_element_type=jnp.float32)  # (TQ, N)
        s = s + bias                               # sparse softmax over edges
        s = s - jnp.max(s, axis=-1, keepdims=True)
        p = jnp.exp(s)
        p = p * pl.reciprocal(jnp.sum(p, axis=-1, keepdims=True), approx=True)
        attn_scr[:, lo:hi] = jnp.dot(p.astype(jnp.bfloat16), vb[:, lo:hi],
                                     preferred_element_type=jnp.float32)

    attn = jnp.dot(attn_scr[...].astype(jnp.bfloat16), wo[...],
                   preferred_element_type=jnp.float32) + bo[...]

    h1 = _layer_norm(xq.astype(jnp.float32) + attn, ln1g[...], ln1b[...])

    f = jnp.dot(h1.astype(jnp.bfloat16), f1w[...],
                preferred_element_type=jnp.float32) + f1b[...]
    f = jnp.maximum(f, 0.0)
    f = jnp.dot(f.astype(jnp.bfloat16), f2w[...],
                preferred_element_type=jnp.float32) + f2b[...]

    return _layer_norm(h1 + f, ln2g[...], ln2b[...])     # (TQ, H) f32


def _block_kernel(x_q_ref, x_all_ref, bias_ref,
                  wq, bq, wkv, bkv, wo, bo, ln1g, ln1b,
                  f1w, f1b, f2w, f2b, ln2g, ln2b,
                  o_ref, attn_scr, *, num_heads):
    out = _attention_ffn(x_q_ref, x_all_ref, bias_ref, wq, bq, wkv, bkv, wo, bo,
                         ln1g, ln1b, f1w, f1b, f2w, f2b, ln2g, ln2b,
                         attn_scr, num_heads=num_heads)
    o_ref[...] = out.astype(o_ref.dtype)


def _block_decode_kernel(x_q_ref, x_all_ref, bias_ref,
                         wq, bq, wkv, bkv, wo, bo, ln1g, ln1b,
                         f1w, f1b, f2w, f2b, ln2g, ln2b,
                         dw1, db1, dw2, db2, dw3, db3,
                         o_ref, attn_scr, *, num_heads):
    out = _attention_ffn(x_q_ref, x_all_ref, bias_ref, wq, bq, wkv, bkv, wo, bo,
                         ln1g, ln1b, f1w, f1b, f2w, f2b, ln2g, ln2b,
                         attn_scr, num_heads=num_heads)
    y = _mlp3(out, dw1, db1, dw2, db2, dw3, db3)   # fused decoder MLP (no LN)
    o_ref[...] = y.astype(o_ref.dtype)


def transformer_block_forward(x, edge_bias, p, *, num_heads, decoder=None,
                              tile_rows=128):
    n, hdim = x.shape
    tq = tile_rows if n % tile_rows == 0 else n
    full = lambda a: pl.BlockSpec(a.shape, lambda i: (0, 0))

    args = [x, x, edge_bias,
            p["wq"], p["bq"], p["wkv"], p["bkv"], p["wo"], p["bo"],
            p["ln1_g"], p["ln1_b"], p["f1_w"], p["f1_b"], p["f2_w"], p["f2_b"],
            p["ln2_g"], p["ln2_b"]]
    in_specs = [pl.BlockSpec((tq, hdim), lambda i: (i, 0)),   # query-row tile
                pl.BlockSpec((n, hdim), lambda i: (0, 0)),    # all nodes (K/V)
                pl.BlockSpec((tq, n), lambda i: (i, 0))]      # mask bias rows
    in_specs += [full(a) for a in args[3:]]

    if decoder is None:
        kernel = functools.partial(_block_kernel, num_heads=num_heads)
        d_out, out_dtype = hdim, jnp.bfloat16
    else:
        kernel = functools.partial(_block_decode_kernel, num_heads=num_heads)
        dec = [decoder["w1"], decoder["b1"], decoder["w2"], decoder["b2"],
               decoder["w3"], decoder["b3"]]
        args += dec
        in_specs += [full(a) for a in dec]
        d_out, out_dtype = decoder["w3"].shape[1], jnp.float32

    return pl.pallas_call(
        kernel,
        out_shape=jax.ShapeDtypeStruct((n, d_out), out_dtype),
        grid=(n // tq,),
        in_specs=in_specs,
        out_specs=pl.BlockSpec((tq, d_out), lambda i: (i, 0)),
        scratch_shapes=[pltpu.VMEM((tq, hdim), jnp.float32)],
        compiler_params=pltpu.CompilerParams(
            dimension_semantics=("parallel",),
            vmem_limit_bytes=_VMEM_LIMIT),
    )(*args)


# ---------------------------------------------------------------------------
# Deterministic parameter construction (PyTorch nn.Linear-style uniform init).
# ---------------------------------------------------------------------------
def _init_linear(key, in_dim, out_dim):
    bound = 1.0 / (in_dim ** 0.5)
    kw, kb = jax.random.split(key)
    w = jax.random.uniform(kw, (in_dim, out_dim), jnp.float32, -bound, bound)
    b = jax.random.uniform(kb, (1, out_dim), jnp.float32, -bound, bound)
    return w.astype(jnp.bfloat16), b        # bf16 weight (MXU), f32 bias


def init_mlp_params(key, in_size, hidden_size, out_size, out_pad=None):
    out_pad = out_size if out_pad is None else out_pad
    k1, k2, k3 = jax.random.split(key, 3)
    w1, b1 = _init_linear(k1, in_size, hidden_size)
    w2, b2 = _init_linear(k2, hidden_size, hidden_size)
    w3, b3 = _init_linear(k3, hidden_size, out_size)
    if out_pad != out_size:
        # lane-dense padding of the final projection; sliced back in wrapper
        w3 = jnp.pad(w3, ((0, 0), (0, out_pad - out_size)))
        b3 = jnp.pad(b3, ((0, 0), (0, out_pad - out_size)))
    return dict(w1=w1, b1=b1, w2=w2, b2=b2, w3=w3, b3=b3,
                ln_g=jnp.ones((1, out_pad), jnp.float32),
                ln_b=jnp.zeros((1, out_pad), jnp.float32))


def init_transformer_params(key, hidden_size):
    ks = jax.random.split(key, 6)
    wq, bq = _init_linear(ks[0], hidden_size, hidden_size)
    wk, bk = _init_linear(ks[1], hidden_size, hidden_size)
    wv, bv = _init_linear(ks[2], hidden_size, hidden_size)
    wo, bo = _init_linear(ks[3], hidden_size, hidden_size)
    f1w, f1b = _init_linear(ks[4], hidden_size, 2 * hidden_size)
    f2w, f2b = _init_linear(ks[5], 2 * hidden_size, hidden_size)
    ones = jnp.ones((1, hidden_size), jnp.float32)
    zeros = jnp.zeros((1, hidden_size), jnp.float32)
    return dict(wq=wq, bq=bq,
                wkv=jnp.concatenate([wk, wv], axis=1),   # fused K|V weight
                bkv=jnp.concatenate([bk, bv], axis=1),
                wo=wo, bo=bo,
                ln1_g=ones, ln1_b=zeros,
                f1_w=f1w, f1_b=f1b, f2_w=f2w, f2_b=f2b,
                ln2_g=ones, ln2_b=zeros)


def encode_transform_decode(x, edge_bias, params, *, num_heads, output_size):
    """Encoder MLP -> N transformer blocks -> decoder MLP (fused into last block)."""
    h = mlp_forward(x, params["encoder"], use_layer_norm=True,
                    out_dtype=jnp.bfloat16)
    blocks = params["blocks"]
    if not blocks:
        y = mlp_forward(h, params["decoder"], use_layer_norm=False,
                        out_dtype=jnp.float32)
    else:
        for blk in blocks[:-1]:
            h = transformer_block_forward(h, edge_bias, blk, num_heads=num_heads)
        y = transformer_block_forward(h, edge_bias, blocks[-1],
                                      num_heads=num_heads,
                                      decoder=params["decoder"])
    return y[:, :output_size]


if __name__ == "__main__":
    # Small synthetic config consistent with the module (hidden_size default 128).
    message_passing_num = 2
    node_input_size = 12
    output_size = 3
    hidden_size = 128
    num_heads = 4
    num_nodes = 256
    num_edges = 2048

    key = jax.random.PRNGKey(0)
    k_x, k_src, k_dst, k_enc, k_dec, k_blocks = jax.random.split(key, 6)

    # graph.x
    x = jax.random.normal(k_x, (num_nodes, node_input_size), jnp.float32)

    # graph.edge_index (+ self loops so every node has at least one neighbour)
    src = jax.random.randint(k_src, (num_edges,), 0, num_nodes)
    dst = jax.random.randint(k_dst, (num_edges,), 0, num_nodes)
    loops = jnp.arange(num_nodes)
    edge_index = jnp.stack([jnp.concatenate([src, loops]),
                            jnp.concatenate([dst, loops])])

    # dglsp.spmatrix(edge_index) sparse softmax (dim=1, i.e. each src row over
    # its dst neighbours) == dense row softmax with an additive bias:
    # 0 on edges, -3e4 elsewhere; stored bf16 to halve HBM traffic.
    edge_bias = jnp.full((num_nodes, num_nodes), _MASK_BIAS, jnp.float32)
    edge_bias = edge_bias.at[edge_index[0], edge_index[1]].set(0.0)
    edge_bias = edge_bias.astype(jnp.bfloat16)
    assert bool(jnp.all(jnp.any(edge_bias == 0.0, axis=1))), \
        "every node needs at least one out-edge (self-loops injected above)"

    out_pad = _round_up(output_size, _LANE)
    block_keys = jax.random.split(k_blocks, message_passing_num)
    params = dict(
        encoder=init_mlp_params(k_enc, node_input_size, hidden_size, hidden_size),
        decoder=init_mlp_params(k_dec, hidden_size, hidden_size, output_size,
                                out_pad=out_pad),
        blocks=[init_transformer_params(bk, hidden_size) for bk in block_keys],
    )

    y = encode_transform_decode(x, edge_bias, params,
                                num_heads=num_heads, output_size=output_size)
    y = jax.block_until_ready(y)

    assert y.shape == (num_nodes, output_size), y.shape
    assert bool(jnp.all(jnp.isfinite(y)))
    print("KERNEL_OK")
</pallas_src>

<mosaic_0001>
module attributes {stable_mosaic.version = 11 : i64} {
  func.func @_mlp_kernel(%arg0: i32, %arg1: memref<128x12xf32, #tpu.memory_space<vmem>>, %arg2: memref<12x128xbf16, #tpu.memory_space<vmem>>, %arg3: memref<1x128xf32, #tpu.memory_space<vmem>>, %arg4: memref<128x128xbf16, #tpu.memory_space<vmem>>, %arg5: memref<1x128xf32, #tpu.memory_space<vmem>>, %arg6: memref<128x128xbf16, #tpu.memory_space<vmem>>, %arg7: memref<1x128xf32, #tpu.memory_space<vmem>>, %arg8: memref<1x128xf32, #tpu.memory_space<vmem>>, %arg9: memref<1x128xf32, #tpu.memory_space<vmem>>, %arg10: memref<128x128xbf16, #tpu.memory_space<vmem>>) attributes {dimension_semantics = [#tpu.dimension_semantics<parallel>], iteration_bounds = array<i64: 2>, scalar_prefetch = 0 : i64, scratch_operands = 0 : i64, tpu.core_type = #tpu.core_type<tc>, window_params = [{transform_indices = @transform_0, window_bounds = array<i64: 128, 12>}, {pipeline_mode = #tpu.pipeline_mode<synchronous>, transform_indices = @transform_1, window_bounds = array<i64: 12, 128>}, {pipeline_mode = #tpu.pipeline_mode<synchronous>, transform_indices = @transform_2, window_bounds = array<i64: 1, 128>}, {pipeline_mode = #tpu.pipeline_mode<synchronous>, transform_indices = @transform_3, window_bounds = array<i64: 128, 128>}, {pipeline_mode = #tpu.pipeline_mode<synchronous>, transform_indices = @transform_4, window_bounds = array<i64: 1, 128>}, {pipeline_mode = #tpu.pipeline_mode<synchronous>, transform_indices = @transform_5, window_bounds = array<i64: 128, 128>}, {pipeline_mode = #tpu.pipeline_mode<synchronous>, transform_indices = @transform_6, window_bounds = array<i64: 1, 128>}, {pipeline_mode = #tpu.pipeline_mode<synchronous>, transform_indices = @transform_7, window_bounds = array<i64: 1, 128>}, {pipeline_mode = #tpu.pipeline_mode<synchronous>, transform_indices = @transform_8, window_bounds = array<i64: 1, 128>}, {transform_indices = @transform_9, window_bounds = array<i64: 128, 128>}]} {
    %c0 = arith.constant 0 : index
    %c0_0 = arith.constant 0 : index
    %0 = vector.load %arg1[%c0, %c0_0] : memref<128x12xf32, #tpu.memory_space<vmem>>, vector<128x12xf32>
    %1 = arith.truncf %0 : vector<128x12xf32> to vector<128x12xbf16>
    %c0_1 = arith.constant 0 : index
    %c0_2 = arith.constant 0 : index
    %2 = vector.load %arg2[%c0_1, %c0_2] : memref<12x128xbf16, #tpu.memory_space<vmem>>, vector<12x128xbf16>
    %cst = arith.constant dense<0.000000e+00> : vector<128x128xf32>
    %3 = tpu.matmul %1, %2, %cst {dimension_numbers = #tpu.dot_dimension_numbers<[1], [0], [0], [1], [0, 0, 1, 1], [], []>} : vector<128x12xbf16>, vector<12x128xbf16>, vector<128x128xf32> -> vector<128x128xf32>
    %c0_3 = arith.constant 0 : index
    %c0_4 = arith.constant 0 : index
    %4 = vector.load %arg3[%c0_3, %c0_4] : memref<1x128xf32, #tpu.memory_space<vmem>>, vector<1x128xf32>
    %5 = vector.broadcast %4 : vector<1x128xf32> to vector<128x128xf32>
    %6 = arith.addf %3, %5 : vector<128x128xf32>
    %cst_5 = arith.constant 0.000000e+00 : f32
    %7 = vector.broadcast %cst_5 : f32 to vector<128x128xf32>
    %8 = arith.maximumf %6, %7 : vector<128x128xf32>
    %9 = arith.truncf %8 : vector<128x128xf32> to vector<128x128xbf16>
    %c0_6 = arith.constant 0 : index
    %c0_7 = arith.constant 0 : index
    %10 = vector.load %arg4[%c0_6, %c0_7] : memref<128x128xbf16, #tpu.memory_space<vmem>>, vector<128x128xbf16>
    %cst_8 = arith.constant dense<0.000000e+00> : vector<128x128xf32>
    %11 = tpu.matmul %9, %10, %cst_8 {dimension_numbers = #tpu.dot_dimension_numbers<[1], [0], [0], [1], [0, 0, 1, 1], [], []>} : vector<128x128xbf16>, vector<128x128xbf16>, vector<128x128xf32> -> vector<128x128xf32>
    %c0_9 = arith.constant 0 : index
    %c0_10 = arith.constant 0 : index
    %12 = vector.load %arg5[%c0_9, %c0_10] : memref<1x128xf32, #tpu.memory_space<vmem>>, vector<1x128xf32>
    %13 = vector.broadcast %12 : vector<1x128xf32> to vector<128x128xf32>
    %14 = arith.addf %11, %13 : vector<128x128xf32>
    %cst_11 = arith.constant 0.000000e+00 : f32
    %15 = vector.broadcast %cst_11 : f32 to vector<128x128xf32>
    %16 = arith.maximumf %14, %15 : vector<128x128xf32>
    %17 = arith.truncf %16 : vector<128x128xf32> to vector<128x128xbf16>
    %c0_12 = arith.constant 0 : index
    %c0_13 = arith.constant 0 : index
    %18 = vector.load %arg6[%c0_12, %c0_13] : memref<128x128xbf16, #tpu.memory_space<vmem>>, vector<128x128xbf16>
    %cst_14 = arith.constant dense<0.000000e+00> : vector<128x128xf32>
    %19 = tpu.matmul %17, %18, %cst_14 {dimension_numbers = #tpu.dot_dimension_numbers<[1], [0], [0], [1], [0, 0, 1, 1], [], []>} : vector<128x128xbf16>, vector<128x128xbf16>, vector<128x128xf32> -> vector<128x128xf32>
    %c0_15 = arith.constant 0 : index
    %c0_16 = arith.constant 0 : index
    %20 = vector.load %arg7[%c0_15, %c0_16] : memref<1x128xf32, #tpu.memory_space<vmem>>, vector<1x128xf32>
    %21 = vector.broadcast %20 : vector<1x128xf32> to vector<128x128xf32>
    %22 = arith.addf %19, %21 : vector<128x128xf32>
    %c0_17 = arith.constant 0 : index
    %c0_18 = arith.constant 0 : index
    %23 = vector.load %arg8[%c0_17, %c0_18] : memref<1x128xf32, #tpu.memory_space<vmem>>, vector<1x128xf32>
    %c0_19 = arith.constant 0 : index
    %c0_20 = arith.constant 0 : index
    %24 = vector.load %arg9[%c0_19, %c0_20] : memref<1x128xf32, #tpu.memory_space<vmem>>, vector<1x128xf32>
    %cst_21 = arith.constant dense<0.000000e+00> : vector<128xf32>
    %25 = vector.multi_reduction <add>, %22, %cst_21 [1] : vector<128x128xf32> to vector<128xf32>
    %26 = vector.shape_cast %25 : vector<128xf32> to vector<128x1xf32>
    %cst_22 = arith.constant 1.280000e+02 : f32
    %27 = vector.broadcast %cst_22 : f32 to vector<128x1xf32>
    %28 = arith.divf %26, %27 : vector<128x1xf32>
    %29 = vector.broadcast %28 : vector<128x1xf32> to vector<128x128xf32>
    %30 = arith.subf %22, %29 : vector<128x128xf32>
    %31 = arith.mulf %30, %30 : vector<128x128xf32>
    %cst_23 = arith.constant dense<0.000000e+00> : vector<128xf32>
    %32 = vector.multi_reduction <add>, %31, %cst_23 [1] : vector<128x128xf32> to vector<128xf32>
    %33 = vector.shape_cast %32 : vector<128xf32> to vector<128x1xf32>
    %cst_24 = arith.constant 1.280000e+02 : f32
    %34 = vector.broadcast %cst_24 : f32 to vector<128x1xf32>
    %35 = arith.divf %33, %34 : vector<128x1xf32>
    %36 = vector.broadcast %28 : vector<128x1xf32> to vector<128x128xf32>
    %37 = arith.subf %22, %36 : vector<128x128xf32>
    %cst_25 = arith.constant 9.99999974E-6 : f32
    %38 = vector.broadcast %cst_25 : f32 to vector<128x1xf32>
    %39 = arith.addf %35, %38 : vector<128x1xf32>
    %40 = math.rsqrt %39 : vector<128x1xf32>
    %41 = vector.broadcast %40 : vector<128x1xf32> to vector<128x128xf32>
    %42 = arith.mulf %37, %41 : vector<128x128xf32>
    %43 = vector.broadcast %23 : vector<1x128xf32> to vector<128x128xf32>
    %44 = arith.mulf %42, %43 : vector<128x128xf32>
    %45 = vector.broadcast %24 : vector<1x128xf32> to vector<128x128xf32>
    %46 = arith.addf %44, %45 : vector<128x128xf32>
    %47 = arith.truncf %46 : vector<128x128xf32> to vector<128x128xbf16>
    %c0_26 = arith.constant 0 : index
    %c0_27 = arith.constant 0 : index
    %48 = vector.load %arg10[%c0_26, %c0_27] : memref<128x128xbf16, #tpu.memory_space<vmem>>, vector<128x128xbf16>
    tpu.vector_store %arg10[%c0_26, %c0_27], %47 {strides = array<i32>} : memref<128x128xbf16, #tpu.memory_space<vmem>>, vector<128x128xbf16>,
    return
  }
  func.func @transform_0(%arg0: i32) -> (i32, i32) {
    %c0_i32 = arith.constant 0 : i32
    %c0_i32_0 = arith.constant 0 : i32
    return %arg0, %c0_i32 : i32, i32
  }
  func.func @transform_1(%arg0: i32) -> (i32, i32) {
    %c0_i32 = arith.constant 0 : i32
    %c0_i32_0 = arith.constant 0 : i32
    %c0_i32_1 = arith.constant 0 : i32
    return %c0_i32, %c0_i32_0 : i32, i32
  }
  func.func @transform_2(%arg0: i32) -> (i32, i32) {
    %c0_i32 = arith.constant 0 : i32
    %c0_i32_0 = arith.constant 0 : i32
    %c0_i32_1 = arith.constant 0 : i32
    return %c0_i32, %c0_i32_0 : i32, i32
  }
  func.func @transform_3(%arg0: i32) -> (i32, i32) {
    %c0_i32 = arith.constant 0 : i32
    %c0_i32_0 = arith.constant 0 : i32
    %c0_i32_1 = arith.constant 0 : i32
    return %c0_i32, %c0_i32_0 : i32, i32
  }
  func.func @transform_4(%arg0: i32) -> (i32, i32) {
    %c0_i32 = arith.constant 0 : i32
    %c0_i32_0 = arith.constant 0 : i32
    %c0_i32_1 = arith.constant 0 : i32
    return %c0_i32, %c0_i32_0 : i32, i32
  }
  func.func @transform_5(%arg0: i32) -> (i32, i32) {
    %c0_i32 = arith.constant 0 : i32
    %c0_i32_0 = arith.constant 0 : i32
    %c0_i32_1 = arith.constant 0 : i32
    return %c0_i32, %c0_i32_0 : i32, i32
  }
  func.func @transform_6(%arg0: i32) -> (i32, i32) {
    %c0_i32 = arith.constant 0 : i32
    %c0_i32_0 = arith.constant 0 : i32
    %c0_i32_1 = arith.constant 0 : i32
    return %c0_i32, %c0_i32_0 : i32, i32
  }
  func.func @transform_7(%arg0: i32) -> (i32, i32) {
    %c0_i32 = arith.constant 0 : i32
    %c0_i32_0 = arith.constant 0 : i32
    %c0_i32_1 = arith.constant 0 : i32
    return %c0_i32, %c0_i32_0 : i32, i32
  }
  func.func @transform_8(%arg0: i32) -> (i32, i32) {
    %c0_i32 = arith.constant 0 : i32
    %c0_i32_0 = arith.constant 0 : i32
    %c0_i32_1 = arith.constant 0 : i32
    return %c0_i32, %c0_i32_0 : i32, i32
  }
  func.func @transform_9(%arg0: i32) -> (i32, i32) {
    %c0_i32 = arith.constant 0 : i32
    %c0_i32_0 = arith.constant 0 : i32
    return %arg0, %c0_i32 : i32, i32
  }
}

</mosaic_0001>

<bundles_post_ra>
// kernel: tpu_custom_call.1
= control target key start
LH: loop header
LB: loop body
LE: loop exit
PB: predicated region body
PF: predicated region fallthrough
CT: control target
= control target key end

     0   :  { %14 = vsyncpa [#allocation3], 0  ;;  %s2072_s0 = inlined_call_operand.vmem [shape: f32[256,12], index: 0, kind: input, shape index: {}]   ;;  %s2073_s1 = inlined_call_operand.vmem [shape: bf16[12,128], index: 1, kind: input, shape index: {}]   ;;  %s2074_s2 = inlined_call_operand.vmem [shape: f32[1,128], index: 2, kind: input, shape index: {}]   ;;  %s2075_s3 = inlined_call_operand.vmem [shape: bf16[128,128], index: 3, kind: input, shape index: {}]   ;;  %s2076_s4 = inlined_call_operand.vmem [shape: f32[1,128], index: 4, kind: input, shape index: {}]   ;;  %s2077_s5 = inlined_call_operand.vmem [shape: bf16[128,128], index: 5, kind: input, shape index: {}]   ;;  %s2078_s6 = inlined_call_operand.vmem [shape: f32[1,128], index: 6, kind: input, shape index: {}]   ;;  %s2079_s7 = inlined_call_operand.vmem [shape: f32[1,128], index: 7, kind: input, shape index: {}]   ;;  %s2080_s8 = inlined_call_operand.vmem [shape: f32[1,128], index: 8, kind: input, shape index: {}]   ;;  %s2081_s9 = inlined_call_operand.hbm [shape: bf16[256,128], index: 9, kind: output, shape index: {}]  }
   0x1   :  { %16 = vsyncpa [#allocation3 + $0x1], 0  ;;  %s1715_s30 = smov 0   ;;  %s1717_s10 = smov 0  }
   0x2   :  { %s1719_s11 = smov 0   ;;  %s1721_s12 = smov 0  }
   0x3 LB: > { %s1736_s13 = sadd.s32 4294967295, %s1660_s12   ;;  %s1262_s14 = sadd.s32 4294967294, %s1660_s12   ;;  %s1660_s12 = sphi %s1721_s12, %s2087_s12   ;;  %s1656_s11 = sphi %s1719_s11, %s2086_s11   ;;  %s1652_s10 = sphi %s1717_s10, %s2085_s10   ;;  %s1648_s30 = sphi %s1715_s30, %s2084_s30  }
   0x4   : > { %s1740_s15 = sadd.s32 1, %s1660_s12   ;;  %s223_s16 = sadd.s32 1, %s1656_s11 }
   0x5   : > { %s220_s17 = ssub.s32 %s1660_s12, %s1740_s15  ;;  %p233_p0 = scmp.ne.s32.totalorder %s1656_s11, %s1652_s10 }
   0x6   : > { %p221_p1 = scmp.eq.s32.totalorder %s220_s17, 0  ;;  %p234_p2 = scmp.eq.s32.totalorder %s1736_s13, 1 }
   0x7   : > { %p239_p3 = scmp.ne.s32.totalorder %s1652_s10, %s1648_s30  ;;  %p240_p4 = scmp.eq.s32.totalorder %s1262_s14, 1 }
   0x8   : > { %s1751_s18 = scalar_select %p221_p1, %s1656_s11, %s223_s16  }
   0x9   : > { %p1753_p5 = por %p234_p2, %p233_p0  ;;  %p1757_p6 = por %p240_p4, %p239_p3 }
   0xa   : > { %p1265_p7 = scmp.ge.s32.totalorder %s1660_s12, 1  ;;  %p291_p8 = scmp.lt.s32.totalorder %s1660_s12, 3 }
   0xc   : > { %p292_p9 = pnand %p1265_p7, %p291_p8 }
   0xd   : > { %v1549_v0 = vld [vmem:[%s2073_s1] sm:$0x3f] (!%p292_p9)   ;;  %vm398_vm0 = vcmask (!%p292_p9), 1045504   ;;  %s1267_s23 = sshll.u32 (!%p292_p9), %s1736_s13, 4  ;;  %v1551_v3 = vld [vmem:[%s2075_s3 + $0x8] sm:$0xff] (!%p292_p9)   ;;  %v1552_v4 = vld [vmem:[%s2075_s3 + $0x10] sm:$0xff] (!%p292_p9)  }
   0xe   : > { %295 = sbr.rel (%p292_p9) target bundleno = 1046 (0x416), region = 56  ;;  %v1550_v1 = vld [vmem:[%s2075_s3] sm:$0xff] (!%p292_p9)   ;;  %1507 = vmatprep.subr.msk.bf16.mxu0 (!%p292_p9), %vm398_vm0, %v1549_v0  ;;  %v400_v2 = vsel (!%p292_p9), %vm398_vm0, %v1549_v0, 0  ;;  %p328_p10 = scmp.lt.s32.totalorder (!%p292_p9), %s1267_s23, 31  ;;  %v1553_v5 = vld [vmem:[%s2075_s3 + $0x18] sm:$0xff] (!%p292_p9)   ;;  %vm373_vm1 = vcmask (!%p292_p9), 97280  }
   0xf   : > { %1426 = vmatpush3.bf16.msra.mxu0 (!%p292_p9), %v400_v2  ;;  %1443 = vmatprep.subr.bf16.mxu1 (!%p292_p9), %v1550_v1  ;;  %v1554_v15 = vld [vmem:[%s2075_s3 + $0x20] sm:$0xff] (!%p292_p9)   ;;  %v1555_v20 = vld [vmem:[%s2075_s3 + $0x28] sm:$0xff] (!%p292_p9)   ;;  %v1556_v32 = vld [vmem:[%s2075_s3 + $0x30] sm:$0xff] (!%p292_p9)   ;;  %s324_s17 = sand.u32 (!%p292_p9), 1, %s1652_s10   ;;  %s1336_s25 = sshll.u32 (!%p292_p9), %s1736_s13, 10 }
  0x10   : > { %1444 = vmatpush3.bf16.msra.mxu1 (!%p292_p9), %v1550_v1  ;;  %v1557_v33 = vld [vmem:[%s2075_s3 + $0x38] sm:$0xff] (!%p292_p9)   ;;  %v1558_v34 = vld [vmem:[%s2077_s5] sm:$0xff] (!%p292_p9)   ;;  %v1559_v35 = vld [vmem:[%s2077_s5 + $0x8] sm:$0xff] (!%p292_p9)   ;;  %s1266_s24 = sshll.u32 (!%p292_p9), %s324_s17, 6  ;;  %s2024_s29 = scalar_lea.hbm (!%p292_p9), %s2081_s9, %s1336_s25 }
  0x11   : > { %1445 = vmatprep.subr.bf16.mxu1 (!%p292_p9), %v1551_v3  ;;  %1475 = vmatprep.subr.bf16.mxu0 (!%p292_p9), %v1558_v34  ;;  %v1560_v36 = vld [vmem:[%s2077_s5 + $0x10] sm:$0xff] (!%p292_p9)   ;;  %v1561_v37 = vld [vmem:[%s2077_s5 + $0x18] sm:$0xff] (!%p292_p9)   ;;  %v1562_v38 = vld [vmem:[%s2077_s5 + $0x20] sm:$0xff] (!%p292_p9)   ;;  %s2031_s13 = scalar_lea.sflag (!%p292_p9), [#allocation3], %s324_s17  ;;  %s1662_s16 = smov (!%p292_p9), [#allocation2]  }
  0x12   : > { %v1563_v39 = vld [vmem:[%s2077_s5 + $0x28] sm:$0xff] (!%p292_p9)   ;;  %v1269_v40 = vld [vmem:[%s2074_s2] ss:$0 sm:$0xff] (!%p292_p9)  ;;  %s1602_s22 = sshll.u32 (!%p292_p9), %s1662_s16, 4  ;;  %s1603_s22 = int_to_ptr.vmem [resolvable:$false] %s1602_s22 }
  0x14   : > { %1446 = vmatpush3.bf16.msra.mxu1 (!%p292_p9), %v1551_v3 }
  0x15   : > { %s2089_s23 = smov (!%p328_p10, %s1267_s23), 31  ;;  %1447 = vmatprep.subr.bf16.mxu1 %v1552_v4 }
  0x16   : > { %s1268_s14 = sshll.u32 %s2089_s23, 3  ;;  %s1974_s23 = scalar_lea.vmem [#allocation2], %s1266_s24 }
  0x17   : > { %s1779_s21 = scalar_lea.vmem %s2072_s0, %s1268_s14  ;;  %s1200_s26 = sshll.u32 %s1974_s23, 4  ;;  %s2026_s26 = int_to_ptr.vmem [resolvable:$true] %s1200_s26 }
  0x18   : > { %v335_v6 = vld [vmem:[%s1779_s21] sm:$0xff]  ;;  %v336_v7 = vld [vmem:[%s1779_s21 + $0x8] sm:$0xff]  ;;  %v337_v8 = vld [vmem:[%s1779_s21 + $0x10] sm:$0xff]  ;;  %1448 = vmatpush3.bf16.msra.mxu1 %v1552_v4  ;;  %s1598_s14 = scalar_lea.vmem %s2026_s26, 1024  ;;  %p1605_p0 = scmp.lt.s32.totalorder %s2026_s26, %s1603_s22 }
  0x19   : > { %v351_v9 = vpack.c.bf16 %v336_v7, %v335_v6  ;;  %v338_v10 = vld [vmem:[%s1779_s21 + $0x18] sm:$0xff]  ;;  %v339_v11 = vld [vmem:[%s1779_s21 + $0x20] sm:$0xff]  ;;  %v340_v12 = vld [vmem:[%s1779_s21 + $0x28] sm:$0xff]  ;;  %1449 = vmatprep.subr.bf16.mxu1 %v1553_v5  ;;  %p1599_p11 = scmp.ne.s32.totalorder %s2026_s26, %s1598_s14 }
  0x1a   : > { %v352_v13 = vpack.c.bf16 %v338_v10, %v337_v8  ;;  %v353_v14 = vpack.c.bf16 %v340_v12, %v339_v11  ;;  %v341_v16 = vld [vmem:[%s1779_s21 + $0x30] sm:$0xff]  ;;  %v342_v17 = vld [vmem:[%s1779_s21 + $0x38] sm:$0xff]  ;;  %v343_v18 = vld [vmem:[%s1779_s21 + $0x40] sm:$0xff] }
  0x1b   : > { %1427 = vmatprep.mubr.msk.bf16.mxu0 %vm373_vm1, %v351_v9  ;;  %v344_v19 = vld [vmem:[%s1779_s21 + $0x48] sm:$0xff]  ;;  %v354_v21 = vpack.c.bf16 %v342_v17, %v341_v16  ;;  %v345_v23 = vld [vmem:[%s1779_s21 + $0x50] sm:$0xff]  ;;  %v346_v24 = vld [vmem:[%s1779_s21 + $0x58] sm:$0xff]  ;;  %p1600_p12 = pnand %p1599_p11, %p1753_p5 }
  0x1c   : > { %1428 = vmatmul.mubr.msk.bf16.vlgmr.msra.gmra.mrb[0].mxu0 %vm373_vm1, %v352_v13  ;;  %1450 = vmatpush3.bf16.msra.mxu1 %v1553_v5  ;;  %v355_v22 = vpack.c.bf16 %v344_v19, %v343_v18  ;;  %v347_v25 = vld [vmem:[%s1779_s21 + $0x60] sm:$0xff]  ;;  %v348_v26 = vld [vmem:[%s1779_s21 + $0x68] sm:$0xff]  ;;  %v356_v27 = vpack.c.bf16 %v346_v24, %v345_v23  ;;  %v349_v29 = vld [vmem:[%s1779_s21 + $0x70] sm:$0xff] }
  0x1d   : > { %1431 = vmatprep.mubr.msk.bf16.mxu0 %vm373_vm1, %v353_v14  ;;  %1451 = vmatprep.subr.bf16.mxu1 %v1554_v15  ;;  %v357_v28 = vpack.c.bf16 %v348_v26, %v347_v25  ;;  %v350_v30 = vld [vmem:[%s1779_s21 + $0x78] sm:$0xff]  ;;  %p1601_p13 = pneg %p1600_p12  ;;  %s1604_s21 = scalar_lea.vmem %s1603_s22, 2048 }
  0x1e   : > { %v358_v31 = vpack.c.bf16 %v350_v30, %v349_v29  ;;  %1476 = vmatpush3.bf16.msra.mxu0 %v1558_v34  ;;  %v1565_v34 = vld [vmem:[%s2077_s5 + $0x38] sm:$0xff]   ;;  %p1606_p1 = scmp.lt.s32.totalorder %s1604_s21, %s1598_s14 }
  0x1f   : > { %1477 = vmatprep.subr.bf16.mxu0 %v1559_v35 }
  0x20   : > { %1452 = vmatpush3.bf16.msra.mxu1 %v1554_v15  ;;  %p1607_p2 = por %p1606_p1, %p1605_p0 }
  0x21   : > { %1453 = vmatprep.subr.bf16.mxu1 %v1555_v20 }
  0x22   : > { %1478 = vmatpush3.bf16.msra.mxu0 %v1559_v35  ;;  %v1279_v35 = vld [vmem:[%s2076_s4] ss:$0 sm:$0xff]  ;;  %p1608_p3 = pnand %p1607_p2, %p1601_p13 }
  0x23   : > { %1479 = vmatprep.subr.bf16.mxu0 %v1560_v36 }
  0x24   : > { %1432 = vmatmul.mubr.msk.bf16.gmra.mrb[4].mxu0 %vm373_vm1, %v354_v21  ;;  %1454 = vmatpush3.bf16.msra.mxu1 %v1555_v20 }
  0x25   : > { %1435 = vmatprep.mubr.msk.bf16.mxu0 %vm373_vm1, %v355_v22  ;;  %1455 = vmatprep.subr.bf16.mxu1 %v1556_v32 }
  0x26   : > { %1480 = vmatpush3.bf16.msra.mxu0 %v1560_v36 }
  0x27   : > { %1481 = vmatprep.subr.bf16.mxu0 %v1561_v37 }
  0x28   : > { %1456 = vmatpush3.bf16.msra.mxu1 %v1556_v32 }
  0x29   : > { %1457 = vmatprep.subr.bf16.mxu1 %v1557_v33 }
  0x2a   : > { %1482 = vmatpush3.bf16.msra.mxu0 %v1561_v37 }
  0x2b   : > { %1483 = vmatprep.subr.bf16.mxu0 %v1562_v38 }
  0x2c   : > { %1436 = vmatmul.mubr.msk.bf16.gmra.mrb[8].mxu0 %vm373_vm1, %v356_v27  ;;  %1458 = vmatpush3.bf16.msra.mxu1 %v1557_v33  ;;  %v1564_v33 = vld [vmem:[%s2077_s5 + $0x30] sm:$0xff]  }
  0x2d   : > { %1439 = vmatprep.mubr.msk.bf16.mxu0 %vm373_vm1, %v357_v28 }
  0x2e   : > { %1484 = vmatpush3.bf16.msra.mxu0 %v1562_v38 }
  0x2f   : > { %1485 = vmatprep.subr.bf16.mxu0 %v1563_v39 }
  0x32   : > { %1486 = vmatpush3.bf16.msra.mxu0 %v1563_v39 }
  0x33   : > { %1487 = vmatprep.subr.bf16.mxu0 %v1564_v33 }
  0x34   : > { %1440 = vmatmul.mubr.msk.bf16.gmra.mrb[12].mxu0 %vm373_vm1, %v358_v31 }
  0x36   : > { %1488 = vmatpush3.bf16.msra.mxu0 %v1564_v33 }
  0x37   : > { %1489 = vmatprep.subr.bf16.mxu0 %v1565_v34 }
  0x3a   : > { %1490 = vmatpush3.bf16.msra.mxu0 %v1565_v34 }
  0xef   : > { %v1429_v41 = vpop.f32.mrb[0].mxu0 }
  0xf0   : > { %v445_v42 = vadd.f32 %v1429_v41, %v1269_v40  ;;  %v436_v43 = vpop.f32.mrb[1].mxu0 }
  0xf1   : > { %v437_v44 = vadd.f32 %v1269_v40, %v436_v43  ;;  %v1430_v45 = vpop.f32.mrb[2].mxu0 }
  0xf2   : > { %v448_v46 = vadd.f32 %v1430_v45, %v1269_v40  ;;  %v439_v47 = vpop.f32.mrb[3].mxu0  ;;  %v501_v49 = vmax.f32 %v445_v42, 0.0 }
  0xf3   : > { %v440_v48 = vadd.f32 %v1269_v40, %v439_v47  ;;  %v499_v51 = vmax.f32 %v437_v44, 0.0 }
  0xf4   : > { %v502_v50 = vmax.f32 %v448_v46, 0.0 }
  0xf5   : > { %v500_v52 = vmax.f32 %v440_v48, 0.0 }
  0xf6   : > { %v516_v53 = vpack.c.bf16 %v502_v50, %v501_v49 }
  0xf7   : > { %v1433_v54 = vpop.f32.mrb[4].mxu0  ;;  %v515_v55 = vpack.c.bf16 %v500_v52, %v499_v51 }
  0xf8   : > { %v461_v56 = vadd.f32 %v1433_v54, %v1269_v40  ;;  %v452_v57 = vpop.f32.mrb[5].mxu0 }
  0xf9   : > { %v453_v58 = vadd.f32 %v1269_v40, %v452_v57  ;;  %v1434_v59 = vpop.f32.mrb[6].mxu0  ;;  %1459 = vmatprep.mubr.bf16.mxu1 %v515_v55 }
  0xfa   : > { %v505_v60 = vmax.f32 %v461_v56, 0.0  ;;  %v464_v61 = vadd.f32 %v1434_v59, %v1269_v40  ;;  %v455_v62 = vpop.f32.mrb[7].mxu0  ;;  %1460 = vmatmul.mubr.bf16.vlgmr.msra.gmra.mrb[0].mxu1 %v516_v53 }
  0xfb   : > { %v456_v63 = vadd.f32 %v1269_v40, %v455_v62  ;;  %v503_v1 = vmax.f32 %v453_v58, 0.0 }
  0xfc   : > { %v506_v0 = vmax.f32 %v464_v61, 0.0 }
  0xfd   : > { %v504_v2 = vmax.f32 %v456_v63, 0.0 }
  0xfe   : > { %v518_v3 = vpack.c.bf16 %v506_v0, %v505_v60 }
  0xff   : > { %v517_v4 = vpack.c.bf16 %v504_v2, %v503_v1  ;;  %v1437_v5 = vpop.f32.mrb[8].mxu0 }
 0x100   : > { %v477_v6 = vadd.f32 %v1437_v5, %v1269_v40  ;;  %v468_v7 = vpop.f32.mrb[9].mxu0 }
 0x101   : > { %v469_v8 = vadd.f32 %v1269_v40, %v468_v7  ;;  %v1438_v9 = vpop.f32.mrb[10].mxu0  ;;  %1463 = vmatprep.mubr.bf16.mxu1 %v517_v4 }
 0x102   : > { %v509_v10 = vmax.f32 %v477_v6, 0.0  ;;  %v480_v11 = vadd.f32 %v1438_v9, %v1269_v40  ;;  %v471_v12 = vpop.f32.mrb[11].mxu0  ;;  %1464 = vmatmul.mubr.bf16.gmra.mrb[4].mxu1 %v518_v3 }
 0x103   : > { %v472_v13 = vadd.f32 %v1269_v40, %v471_v12  ;;  %v507_v15 = vmax.f32 %v469_v8, 0.0 }
 0x104   : > { %v510_v14 = vmax.f32 %v480_v11, 0.0 }
 0x105   : > { %v508_v16 = vmax.f32 %v472_v13, 0.0 }
 0x106   : > { %v520_v17 = vpack.c.bf16 %v510_v14, %v509_v10 }
 0x107   : > { %v519_v18 = vpack.c.bf16 %v508_v16, %v507_v15  ;;  %v1441_v19 = vpop.f32.mrb[12].mxu0 }
 0x108   : > { %v493_v20 = vadd.f32 %v1441_v19, %v1269_v40  ;;  %v484_v21 = vpop.f32.mrb[13].mxu0 }
 0x109   : > { %v485_v22 = vadd.f32 %v1269_v40, %v484_v21  ;;  %v1442_v23 = vpop.f32.mrb[14].mxu0  ;;  %1467 = vmatprep.mubr.bf16.mxu1 %v519_v18 }
 0x10a   : > { %v513_v24 = vmax.f32 %v493_v20, 0.0  ;;  %v496_v25 = vadd.f32 %v1442_v23, %v1269_v40  ;;  %v487_v26 = vpop.f32.mrb[15].mxu0  ;;  %1468 = vmatmul.mubr.bf16.gmra.mrb[8].mxu1 %v520_v17 }
 0x10b   : > { %v488_v27 = vadd.f32 %v1269_v40, %v487_v26  ;;  %v511_v29 = vmax.f32 %v485_v22, 0.0 }
 0x10c   : > { %v514_v28 = vmax.f32 %v496_v25, 0.0 }
 0x10d   : > { %v512_v30 = vmax.f32 %v488_v27, 0.0 }
 0x10e   : > { %v522_v31 = vpack.c.bf16 %v514_v28, %v513_v24  ;;  %v1288_v28 = vld [vmem:[%s2078_s6] ss:$0 sm:$0xff] }
 0x10f   : > { %v521_v32 = vpack.c.bf16 %v512_v30, %v511_v29 }
 0x111   : > { %1471 = vmatprep.mubr.bf16.mxu1 %v521_v32 }
 0x112   : > { %1472 = vmatmul.mubr.bf16.gmra.mrb[12].mxu1 %v522_v31 }
 0x1cd   : > { %v1461_v36 = vpop.f32.mrb[0].mxu1 }
 0x1ce   : > { %v637_v37 = vadd.f32 %v1461_v36, %v1279_v35  ;;  %v628_v38 = vpop.f32.mrb[1].mxu1 }
 0x1cf   : > { %v629_v39 = vadd.f32 %v1279_v35, %v628_v38  ;;  %v1462_v40 = vpop.f32.mrb[2].mxu1 }
 0x1d0   : > { %v640_v41 = vadd.f32 %v1462_v40, %v1279_v35  ;;  %v631_v42 = vpop.f32.mrb[3].mxu1  ;;  %v693_v44 = vmax.f32 %v637_v37, 0.0 }
 0x1d1   : > { %v632_v43 = vadd.f32 %v1279_v35, %v631_v42  ;;  %v691_v46 = vmax.f32 %v629_v39, 0.0 }
 0x1d2   : > { %v694_v45 = vmax.f32 %v640_v41, 0.0 }
 0x1d3   : > { %v692_v47 = vmax.f32 %v632_v43, 0.0 }
 0x1d4   : > { %v708_v48 = vpack.c.bf16 %v694_v45, %v693_v44 }
 0x1d5   : > { %v707_v49 = vpack.c.bf16 %v692_v47, %v691_v46  ;;  %v1465_v50 = vpop.f32.mrb[4].mxu1 }
 0x1d6   : > { %v653_v51 = vadd.f32 %v1465_v50, %v1279_v35  ;;  %v644_v52 = vpop.f32.mrb[5].mxu1 }
 0x1d7   : > { %v645_v53 = vadd.f32 %v1279_v35, %v644_v52  ;;  %v1466_v54 = vpop.f32.mrb[6].mxu1  ;;  %1491 = vmatprep.mubr.bf16.mxu0 %v707_v49 }
 0x1d8   : > { %v656_v55 = vadd.f32 %v1466_v54, %v1279_v35  ;;  %v647_v56 = vpop.f32.mrb[7].mxu1  ;;  %1492 = vmatmul.mubr.bf16.vlgmr.msra.gmra.mrb[16].mxu0 %v708_v48  ;;  %v697_v58 = vmax.f32 %v653_v51, 0.0 }
 0x1d9   : > { %v648_v57 = vadd.f32 %v1279_v35, %v647_v56  ;;  %v695_v60 = vmax.f32 %v645_v53, 0.0 }
 0x1da   : > { %v698_v59 = vmax.f32 %v656_v55, 0.0 }
 0x1db   : > { %v696_v61 = vmax.f32 %v648_v57, 0.0 }
 0x1dc   : > { %v710_v62 = vpack.c.bf16 %v698_v59, %v697_v58 }
 0x1dd   : > { %v709_v63 = vpack.c.bf16 %v696_v61, %v695_v60  ;;  %v1469_v0 = vpop.f32.mrb[8].mxu1 }
 0x1de   : > { %v669_v1 = vadd.f32 %v1469_v0, %v1279_v35  ;;  %v660_v2 = vpop.f32.mrb[9].mxu1 }
 0x1df   : > { %v661_v3 = vadd.f32 %v1279_v35, %v660_v2  ;;  %v1470_v4 = vpop.f32.mrb[10].mxu1  ;;  %1495 = vmatprep.mubr.bf16.mxu0 %v709_v63 }
 0x1e0   : > { %v672_v5 = vadd.f32 %v1470_v4, %v1279_v35  ;;  %v663_v6 = vpop.f32.mrb[11].mxu1  ;;  %1496 = vmatmul.mubr.bf16.gmra.mrb[20].mxu0 %v710_v62  ;;  %v701_v8 = vmax.f32 %v669_v1, 0.0 }
 0x1e1   : > { %v664_v7 = vadd.f32 %v1279_v35, %v663_v6  ;;  %v699_v10 = vmax.f32 %v661_v3, 0.0 }
 0x1e2   : > { %v702_v9 = vmax.f32 %v672_v5, 0.0 }
 0x1e3   : > { %v700_v11 = vmax.f32 %v664_v7, 0.0 }
 0x1e4   : > { %v712_v12 = vpack.c.bf16 %v702_v9, %v701_v8 }
 0x1e5   : > { %v711_v13 = vpack.c.bf16 %v700_v11, %v699_v10  ;;  %v1473_v14 = vpop.f32.mrb[12].mxu1 }
 0x1e6   : > { %v685_v15 = vadd.f32 %v1473_v14, %v1279_v35  ;;  %v676_v16 = vpop.f32.mrb[13].mxu1 }
 0x1e7   : > { %v677_v17 = vadd.f32 %v1279_v35, %v676_v16  ;;  %v1474_v18 = vpop.f32.mrb[14].mxu1  ;;  %1499 = vmatprep.mubr.bf16.mxu0 %v711_v13 }
 0x1e8   : > { %v688_v19 = vadd.f32 %v1474_v18, %v1279_v35  ;;  %v679_v20 = vpop.f32.mrb[15].mxu1  ;;  %1500 = vmatmul.mubr.bf16.gmra.mrb[24].mxu0 %v712_v12  ;;  %v705_v22 = vmax.f32 %v685_v15, 0.0 }
 0x1e9   : > { %v680_v21 = vadd.f32 %v1279_v35, %v679_v20  ;;  %v703_v24 = vmax.f32 %v677_v17, 0.0 }
 0x1ea   : > { %v706_v23 = vmax.f32 %v688_v19, 0.0 }
 0x1eb   : > { %v704_v25 = vmax.f32 %v680_v21, 0.0 }
 0x1ec   : > { %v714_v26 = vpack.c.bf16 %v706_v23, %v705_v22 }
 0x1ed   : > { %v713_v27 = vpack.c.bf16 %v704_v25, %v703_v24 }
 0x1ef   : > { %1503 = vmatprep.mubr.bf16.mxu0 %v713_v27 }
 0x1f0   : > { %1504 = vmatmul.mubr.bf16.gmra.mrb[28].mxu0 %v714_v26 }
 0x2ab   : > { %v1493_v29 = vpop.f32.mrb[16].mxu0 }
 0x2ac   : > { %v829_v30 = vadd.f32 %v1493_v29, %v1288_v28  ;;  %v820_v31 = vpop.f32.mrb[17].mxu0 }
 0x2ad   : > { %v821_v32 = vadd.f32 %v1288_v28, %v820_v31  ;;  %v1494_v33 = vpop.f32.mrb[18].mxu0 }
 0x2ae   : > { %889 = vadd.xlane.f32.xlu1 %v829_v30  ;;  %v823_v34 = vpop.f32.mrb[19].mxu0  ;;  %v832_v35 = vadd.f32 %v1494_v33, %v1288_v28 }
 0x2af   : > { %885 = vadd.xlane.f32.xlu0 %v821_v32  ;;  %v824_v36 = vadd.f32 %v1288_v28, %v823_v34 }
 0x2b2   : > { %891 = vadd.xlane.f32.xlu1 %v832_v35 }
 0x2b3   : > { %v1497_v37 = vpop.f32.mrb[20].mxu0  ;;  %887 = vadd.xlane.f32.xlu0 %v824_v36 }
 0x2b4   : > { %v845_v38 = vadd.f32 %v1497_v37, %v1288_v28  ;;  %v836_v39 = vpop.f32.mrb[21].mxu0 }
 0x2b5   : > { %v1498_v40 = vpop.f32.mrb[22].mxu0  ;;  %v837_v43 = vadd.f32 %v1288_v28, %v836_v39 }
 0x2b6   : > { %v848_v41 = vadd.f32 %v1498_v40, %v1288_v28  ;;  %v839_v42 = vpop.f32.mrb[23].mxu0 }
 0x2b7   : > { %897 = vadd.xlane.f32.xlu0 %v845_v38  ;;  %v840_v44 = vadd.f32 %v1288_v28, %v839_v42 }
 0x2b8   : > { %899 = vadd.xlane.f32.xlu1 %v848_v41 }
 0x2bb   : > { %v1501_v45 = vpop.f32.mrb[24].mxu0  ;;  %893 = vadd.xlane.f32.xlu0 %v837_v43 }
 0x2bc   : > { %v1853_v46 = vadd.f32 %v1501_v45, %v1288_v28  ;;  %v852_v47 = vpop.f32.mrb[25].mxu0  ;;  %895 = vadd.xlane.f32.xlu1 %v840_v44 }
 0x2bd   : > { %v1502_v48 = vpop.f32.mrb[26].mxu0  ;;  %v1859_v51 = vadd.f32 %v1288_v28, %v852_v47 }
 0x2be   : > { %v1855_v49 = vadd.f32 %v1502_v48, %v1288_v28  ;;  %v855_v50 = vpop.f32.mrb[27].mxu0 }
 0x2bf   : > { %905 = vadd.xlane.f32.xlu0 %v1853_v46  ;;  %v1861_v52 = vadd.f32 %v1288_v28, %v855_v50 }
 0x2c0   : > { %907 = vadd.xlane.f32.xlu1 %v1855_v49 }
 0x2c3   : > { %v1505_v53 = vpop.f32.mrb[28].mxu0  ;;  %901 = vadd.xlane.f32.xlu0 %v1859_v51 }
 0x2c4   : > { %v868_v54 = vpop.f32.mrb[29].mxu0  ;;  %903 = vadd.xlane.f32.xlu1 %v1861_v52  ;;  %v1870_v59 = vadd.f32 %v1505_v53, %v1288_v28 }
 0x2c5   : > { %v1865_v55 = vadd.f32 %v1288_v28, %v868_v54  ;;  %v1506_v56 = vpop.f32.mrb[30].mxu0 }
 0x2c6   : > { %v871_v57 = vpop.f32.mrb[31].mxu0  ;;  %v1873_v60 = vadd.f32 %v1506_v56, %v1288_v28 }
 0x2c7   : > { %v1867_v58 = vadd.f32 %v1288_v28, %v871_v57  ;;  %909 = vadd.xlane.f32.xlu0 %v1865_v55 }
 0x2c9   : > { %911 = vadd.xlane.f32.xlu1 %v1867_v58 }
 0x2cb   : > { %913 = vadd.xlane.f32.xlu0 %v1870_v59 }
 0x2cd   : > { %915 = vadd.xlane.f32.xlu1 %v1873_v60 }
 0x33b   : > { %v890_v61 = vpop.xlane.xlu1 %889 }
 0x33c   : > { %v920_v62 = vmul.f32 0.0078125, %v890_v61  ;;  %v886_v63 = vpop.xlane.xlu0 %885 }
 0x33d   : > { %v918_v0 = vmul.f32 0.0078125, %v886_v63 }
 0x33e   : > { %v1877_v1 = vsub.f32 %v829_v30, %v920_v62 }
 0x33f   : > { %v892_v2 = vpop.xlane.xlu1 %891  ;;  %v1879_v3 = vsub.f32 %v821_v32, %v918_v0 }
 0x340   : > { %v921_v4 = vmul.f32 0.0078125, %v892_v2  ;;  %v888_v5 = vpop.xlane.xlu0 %887  ;;  %v952_v6 = vmul.f32 %v1877_v1, %v1877_v1 }
 0x341   : > { %v919_v7 = vmul.f32 0.0078125, %v888_v5  ;;  %v950_v12 = vmul.f32 %v1879_v3, %v1879_v3 }
 0x342   : > { %v1883_v8 = vsub.f32 %v832_v35, %v921_v4  ;;  %970 = vadd.xlane.f32.xlu0 %v952_v6 }
 0x343   : > { %v1885_v9 = vsub.f32 %v824_v36, %v919_v7 }
 0x344   : > { %v898_v10 = vpop.xlane.xlu0 %897  ;;  %v953_v11 = vmul.f32 %v1883_v8, %v1883_v8 }
 0x345   : > { %v924_v13 = vmul.f32 0.0078125, %v898_v10  ;;  %v900_v14 = vpop.xlane.xlu1 %899  ;;  %v951_v19 = vmul.f32 %v1885_v9, %v1885_v9 }
 0x346   : > { %v925_v15 = vmul.f32 0.0078125, %v900_v14  ;;  %972 = vadd.xlane.f32.xlu1 %v953_v11  ;;  %966 = vadd.xlane.f32.xlu0 %v950_v12 }
 0x347   : > { %v1891_v16 = vsub.f32 %v845_v38, %v924_v13 }
 0x348   : > { %v1893_v17 = vsub.f32 %v848_v41, %v925_v15  ;;  %v894_v18 = vpop.xlane.xlu0 %893 }
 0x349   : > { %v922_v20 = vmul.f32 0.0078125, %v894_v18  ;;  %v896_v21 = vpop.xlane.xlu1 %895  ;;  %v956_v22 = vmul.f32 %v1891_v16, %v1891_v16 }
 0x34a   : > { %v923_v23 = vmul.f32 0.0078125, %v896_v21  ;;  %968 = vadd.xlane.f32.xlu1 %v951_v19  ;;  %v957_v27 = vmul.f32 %v1893_v17, %v1893_v17 }
 0x34b   : > { %v1899_v24 = vsub.f32 %v837_v43, %v922_v20  ;;  %978 = vadd.xlane.f32.xlu0 %v956_v22 }
 0x34c   : > { %v1901_v25 = vsub.f32 %v840_v44, %v923_v23  ;;  %v906_v26 = vpop.xlane.xlu0 %905 }
 0x34d   : > { %v928_v28 = vmul.f32 0.0078125, %v906_v26  ;;  %v908_v29 = vpop.xlane.xlu1 %907  ;;  %v954_v30 = vmul.f32 %v1899_v24, %v1899_v24  ;;  %v1952_v26 = vld [vmem:[%s2079_s7] ss:$0 sm:$0xff] }
 0x34e   : > { %v929_v31 = vmul.f32 0.0078125, %v908_v29  ;;  %980 = vadd.xlane.f32.xlu1 %v957_v27  ;;  %v955_v35 = vmul.f32 %v1901_v25, %v1901_v25 }
 0x34f   : > { %v1908_v32 = vsub.f32 %v1853_v46, %v928_v28  ;;  %974 = vadd.xlane.f32.xlu0 %v954_v30 }
 0x350   : > { %v1911_v33 = vsub.f32 %v1855_v49, %v929_v31  ;;  %v902_v34 = vpop.xlane.xlu0 %901 }
 0x351   : > { %v926_v36 = vmul.f32 0.0078125, %v902_v34  ;;  %v904_v37 = vpop.xlane.xlu1 %903  ;;  %v960_v38 = vmul.f32 %v1908_v32, %v1908_v32 }
 0x352   : > { %v927_v39 = vmul.f32 0.0078125, %v904_v37  ;;  %976 = vadd.xlane.f32.xlu1 %v955_v35  ;;  %v961_v43 = vmul.f32 %v1911_v33, %v1911_v33 }
 0x353   : > { %v1918_v40 = vsub.f32 %v1859_v51, %v926_v36  ;;  %986 = vadd.xlane.f32.xlu0 %v960_v38 }
 0x354   : > { %v1921_v41 = vsub.f32 %v1861_v52, %v927_v39  ;;  %v910_v42 = vpop.xlane.xlu0 %909  ;;  %v1960_v39 = vld [vmem:[%s2080_s8] ss:$0 sm:$0xff] }
 0x355   : > { %v930_v44 = vmul.f32 0.0078125, %v910_v42  ;;  %v958_v45 = vmul.f32 %v1918_v40, %v1918_v40 }
 0x356   : > { %v912_v46 = vpop.xlane.xlu1 %911  ;;  %988 = vadd.xlane.f32.xlu1 %v961_v43  ;;  %v959_v50 = vmul.f32 %v1921_v41, %v1921_v41 }
 0x357   : > { %v1928_v47 = vsub.f32 %v1865_v55, %v930_v44  ;;  %v931_v48 = vmul.f32 0.0078125, %v912_v46  ;;  %982 = vadd.xlane.f32.xlu0 %v958_v45 }
 0x358   : > { %v914_v49 = vpop.xlane.xlu0 %913 }
 0x359   : > { %v1933_v51 = vsub.f32 %v1867_v58, %v931_v48  ;;  %v932_v52 = vmul.f32 0.0078125, %v914_v49  ;;  %v962_v53 = vmul.f32 %v1928_v47, %v1928_v47 }
 0x35a   : > { %v916_v54 = vpop.xlane.xlu1 %915  ;;  %984 = vadd.xlane.f32.xlu1 %v959_v50 }
 0x35b   : > { %v1938_v56 = vsub.f32 %v1870_v59, %v932_v52  ;;  %v933_v55 = vmul.f32 0.0078125, %v916_v54  ;;  %990 = vadd.xlane.f32.xlu0 %v962_v53  ;;  %v963_v57 = vmul.f32 %v1933_v51, %v1933_v51 }
 0x35d   : > { %v1943_v61 = vsub.f32 %v1873_v60, %v933_v55  ;;  %v964_v58 = vmul.f32 %v1938_v56, %v1938_v56 }
 0x35e   : > { %992 = vadd.xlane.f32.xlu1 %v963_v57 }
 0x35f   : > { %994 = vadd.xlane.f32.xlu0 %v964_v58  ;;  %v965_v62 = vmul.f32 %v1943_v61, %v1943_v61 }
 0x362   : > { %996 = vadd.xlane.f32.xlu1 %v965_v62 }
 0x3cf   : > { %v971_v63 = vpop.xlane.xlu0 %970 }
 0x3d0   : > { %v1000_v59 = vmul.f32 0.0078125, %v971_v63 }
 0x3d2   : > { %v1016_v0 = vadd.f32 1e-05, %v1000_v59 }
 0x3d3   : > { %v973_v2 = vpop.xlane.xlu1 %972  ;;  %v967_v4 = vpop.xlane.xlu0 %966 }
 0x3d4   : > { %1566 = vrsqrt.f32 %v1016_v0  ;;  %v1001_v5 = vmul.f32 0.0078125, %v973_v2  ;;  %v998_v6 = vmul.f32 0.0078125, %v967_v4 }
 0x3d6   : > { %v1017_v7 = vadd.f32 1e-05, %v1001_v5  ;;  %v1014_v60 = vadd.f32 1e-05, %v998_v6 }
 0x3d7   : > { %v969_v10 = vpop.xlane.xlu1 %968 }
 0x3d8   : > { %1568 = vrsqrt.f32 %v1017_v7  ;;  %v999_v11 = vmul.f32 0.0078125, %v969_v10  ;;  %v979_v12 = vpop.xlane.xlu0 %978 }
 0x3d9   : > { %1570 = vrsqrt.f32 %v1014_v60  ;;  %v1004_v13 = vmul.f32 0.0078125, %v979_v12 }
 0x3da   : > { %v1015_v14 = vadd.f32 1e-05, %v999_v11 }
 0x3db   : > { %v1020_v15 = vadd.f32 1e-05, %v1004_v13  ;;  %v981_v18 = vpop.xlane.xlu1 %980 }
 0x3dc   : > { %1572 = vrsqrt.f32 %v1015_v14  ;;  %v1005_v19 = vmul.f32 0.0078125, %v981_v18  ;;  %v975_v20 = vpop.xlane.xlu0 %974 }
 0x3dd   : > { %1574 = vrsqrt.f32 %v1020_v15  ;;  %v1002_v21 = vmul.f32 0.0078125, %v975_v20 }
 0x3de   : > { %v1567_v22 = vpop.eup %1566  ;;  %v1021_v23 = vadd.f32 1e-05, %v1005_v19 }
 0x3df   : > { %v1048_v27 = vmul.f32 %v1567_v22, %v1877_v1  ;;  %v1018_v28 = vadd.f32 1e-05, %v1002_v21  ;;  %v977_v29 = vpop.xlane.xlu1 %976 }
 0x3e0   : > { %1576 = vrsqrt.f32 %v1021_v23  ;;  %v1003_v30 = vmul.f32 0.0078125, %v977_v29  ;;  %v987_v31 = vpop.xlane.xlu0 %986 }
 0x3e1   : > { %1578 = vrsqrt.f32 %v1018_v28  ;;  %v1008_v34 = vmul.f32 0.0078125, %v987_v31  ;;  %v1070_v36 = vmul.f32 %v1952_v26, %v1048_v27 }
 0x3e2   : > { %v1569_v35 = vpop.eup %1568  ;;  %v1019_v37 = vadd.f32 1e-05, %v1003_v30 }
 0x3e3   : > { %v1571_v38 = vpop.eup %1570  ;;  %v1049_v1 = vmul.f32 %v1569_v35, %v1883_v8  ;;  %v1024_v42 = vadd.f32 1e-05, %v1008_v34  ;;  %v989_v43 = vpop.xlane.xlu1 %988  ;;  %v1092_v52 = vadd.f32 %v1960_v39, %v1070_v36 }
 0x3e4   : > { %v1046_v44 = vmul.f32 %v1571_v38, %v1879_v3  ;;  %1580 = vrsqrt.f32 %v1019_v37  ;;  %v1009_v45 = vmul.f32 0.0078125, %v989_v43  ;;  %v983_v46 = vpop.xlane.xlu0 %982 }
 0x3e5   : > { %v1071_v48 = vmul.f32 %v1952_v26, %v1049_v1  ;;  %1582 = vrsqrt.f32 %v1024_v42  ;;  %v1006_v49 = vmul.f32 0.0078125, %v983_v46 }
 0x3e6   : > { %v1573_v50 = vpop.eup %1572  ;;  %v1025_v53 = vadd.f32 1e-05, %v1009_v45  ;;  %v1068_v55 = vmul.f32 %v1952_v26, %v1046_v44 }
 0x3e7   : > { %v1575_v54 = vpop.eup %1574  ;;  %v1093_v8 = vadd.f32 %v1960_v39, %v1071_v48  ;;  %v1047_v3 = vmul.f32 %v1573_v50, %v1885_v9  ;;  %v1022_v57 = vadd.f32 1e-05, %v1006_v49  ;;  %v985_v58 = vpop.xlane.xlu1 %984 }
 0x3e8   : > { %v1052_v62 = vmul.f32 %v1575_v54, %v1891_v16  ;;  %1584 = vrsqrt.f32 %v1025_v53  ;;  %v1007_v63 = vmul.f32 0.0078125, %v985_v58  ;;  %v991_v59 = vpop.xlane.xlu0 %990  ;;  %v1090_v9 = vadd.f32 %v1960_v39, %v1068_v55 }
 0x3e9   : > { %v1345_v0 = vpack.c.bf16 %v1093_v8, %v1092_v52  ;;  %v1069_v2 = vmul.f32 %v1952_v26, %v1047_v3  ;;  %1586 = vrsqrt.f32 %v1022_v57  ;;  %v1010_v4 = vmul.f32 0.0078125, %v991_v59 }
 0x3ea   : > { %v1577_v5 = vpop.eup %1576  ;;  %v1074_v6 = vmul.f32 %v1952_v26, %v1052_v62  ;;  %v1023_v7 = vadd.f32 1e-05, %v1007_v63 }
 0x3eb   : > { %v1579_v60 = vpop.eup %1578  ;;  %1377 = vst [vmem:[%s1974_s23 + $0x8] sm:$0xff] %v1345_v0   ;;  %v1091_v16 = vadd.f32 %v1960_v39, %v1069_v2  ;;  %v1053_v10 = vmul.f32 %v1577_v5, %v1893_v17  ;;  %v1026_v11 = vadd.f32 1e-05, %v1010_v4  ;;  %v993_v12 = vpop.xlane.xlu1 %992 }
 0x3ec   : > { %v1050_v13 = vmul.f32 %v1579_v60, %v1899_v24  ;;  %1588 = vrsqrt.f32 %v1023_v7  ;;  %v1011_v14 = vmul.f32 0.0078125, %v993_v12  ;;  %v995_v15 = vpop.xlane.xlu0 %994  ;;  %v1096_v22 = vadd.f32 %v1960_v39, %v1074_v6 }
 0x3ed   : > { %v1340_v18 = vpack.c.bf16 %v1091_v16, %v1090_v9  ;;  %v1075_v19 = vmul.f32 %v1952_v26, %v1053_v10  ;;  %1590 = vrsqrt.f32 %v1026_v11  ;;  %v1012_v20 = vmul.f32 0.0078125, %v995_v15 }
 0x3ee   : > { %v1581_v21 = vpop.eup %1580  ;;  %v1027_v23 = vadd.f32 1e-05, %v1011_v14  ;;  %v1072_v28 = vmul.f32 %v1952_v26, %v1050_v13 }
 0x3ef   : > { %v1583_v27 = vpop.eup %1582  ;;  %1341 = vst [vmem:[%s1974_s23] sm:$0xff] %v1340_v18   ;;  %v1097_v17 = vadd.f32 %v1960_v39, %v1075_v19  ;;  %v1051_v24 = vmul.f32 %v1581_v21, %v1901_v25  ;;  %v1028_v29 = vadd.f32 1e-05, %v1012_v20  ;;  %v997_v30 = vpop.xlane.xlu1 %996 }
 0x3f0   : > { %v1056_v31 = vmul.f32 %v1583_v27, %v1908_v32  ;;  %1592 = vrsqrt.f32 %v1027_v23  ;;  %v1013_v34 = vmul.f32 0.0078125, %v997_v30  ;;  %v1094_v42 = vadd.f32 %v1960_v39, %v1072_v28 }
 0x3f1   : > { %v1355_v35 = vpack.c.bf16 %v1097_v17, %v1096_v22  ;;  %v1073_v36 = vmul.f32 %v1952_v26, %v1051_v24  ;;  %1594 = vrsqrt.f32 %v1028_v29 }
 0x3f2   : > { %v1585_v37 = vpop.eup %1584  ;;  %v1029_v38 = vadd.f32 1e-05, %v1013_v34  ;;  %v1078_v25 = vmul.f32 %v1952_v26, %v1056_v31 }
 0x3f3   : > { %v1587_v1 = vpop.eup %1586  ;;  %1379 = vst [vmem:[%s1974_s23 + $0x18] sm:$0xff] %v1355_v35   ;;  %v1095_v43 = vadd.f32 %v1960_v39, %v1073_v36  ;;  %v1057_v44 = vmul.f32 %v1585_v37, %v1911_v33 }
 0x3f4   : > { %v1054_v32 = vmul.f32 %v1587_v1, %v1918_v40  ;;  %1596 = vrsqrt.f32 %v1029_v38  ;;  %v1100_v50 = vadd.f32 %v1960_v39, %v1078_v25 }
 0x3f5   : > { %v1350_v45 = vpack.c.bf16 %v1095_v43, %v1094_v42  ;;  %v1079_v46 = vmul.f32 %v1952_v26, %v1057_v44 }
 0x3f6   : > { %v1589_v48 = vpop.eup %1588  ;;  %v1076_v53 = vmul.f32 %v1952_v26, %v1054_v32 }
 0x3f7   : > { %v1591_v49 = vpop.eup %1590  ;;  %1378 = vst [vmem:[%s1974_s23 + $0x10] sm:$0xff] %v1350_v45   ;;  %v1101_v52 = vadd.f32 %v1960_v39, %v1079_v46  ;;  %v1055_v54 = vmul.f32 %v1589_v48, %v1921_v41 }
 0x3f8   : > { %v1058_v33 = vmul.f32 %v1591_v49, %v1928_v47  ;;  %v1098_v57 = vadd.f32 %v1960_v39, %v1076_v53 }
 0x3f9   : > { %v1365_v40 = vpack.c.bf16 %v1101_v52, %v1100_v50  ;;  %v1077_v8 = vmul.f32 %v1952_v26, %v1055_v54 }
 0x3fa   : > { %v1593_v55 = vpop.eup %1592  ;;  %v1080_v62 = vmul.f32 %v1952_v26, %v1058_v33 }
 0x3fb   : > { %v1595_v3 = vpop.eup %1594  ;;  %1381 = vst [vmem:[%s1974_s23 + $0x28] sm:$0xff] %v1365_v40   ;;  %v1099_v58 = vadd.f32 %v1960_v39, %v1077_v8  ;;  %v1059_v63 = vmul.f32 %v1593_v55, %v1933_v51 }
 0x3fc   : > { %v1060_v41 = vmul.f32 %v1595_v3, %v1938_v56  ;;  %v1102_v2 = vadd.f32 %v1960_v39, %v1080_v62 }
 0x3fd   : > { %v1360_v47 = vpack.c.bf16 %v1099_v58, %v1098_v57  ;;  %v1081_v59 = vmul.f32 %v1952_v26, %v1059_v63 }
 0x3fe   : > { %v1597_v0 = vpop.eup %1596  ;;  %v1082_v5 = vmul.f32 %v1952_v26, %v1060_v41 }
 0x3ff   : > { %1380 = vst [vmem:[%s1974_s23 + $0x20] sm:$0xff] %v1360_v47   ;;  %v1103_v4 = vadd.f32 %v1960_v39, %v1081_v59  ;;  %v1061_v6 = vmul.f32 %v1597_v0, %v1943_v61 }
 0x400   : > { %v1104_v56 = vadd.f32 %v1960_v39, %v1082_v5 }
 0x401   : > { %v1370_v7 = vpack.c.bf16 %v1103_v4, %v1102_v2  ;;  %v1083_v51 = vmul.f32 %v1952_v26, %v1061_v6 }
 0x403   : > { %1382 = vst [vmem:[%s1974_s23 + $0x30] sm:$0xff] %v1370_v7   ;;  %v1105_v60 = vadd.f32 %v1960_v39, %v1083_v51 }
 0x405   : > { %v1375_v61 = vpack.c.bf16 %v1105_v60, %v1104_v56 }
 0x407   : > { %1383 = vst [vmem:[%s1974_s23 + $0x38] sm:$0xff] %v1375_v61  }
 0x408   : > { %1611 = shalt.err (!%p1608_p3)
}
 0x409   : > { %s1612_s17 = scalar_lea.hbm %s2024_s29, 1024  ;;  %s1616_s25 = scalar_lea.hbm %s2081_s9, 2048 }
 0x40a   : > { %p1613_p4 = scmp.ne.s32.totalorder %s2024_s29, %s1612_s17  ;;  %p1617_p9 = scmp.lt.u32.totalorder %s2024_s29, %s2081_s9 }
 0x40b   : > { %p1618_p10 = scmp.lt.u32.totalorder %s1616_s25, %s1612_s17  ;;  %p1620_p12 = scmp.lt.u32.totalorder %s1612_s17, %s2024_s29 }
 0x40c   : > { %p1614_p7 = pnand %p1613_p4, %p1753_p5 }
 0x40d   : > { %p1619_p11 = por %p1618_p10, %p1617_p9 }
 0x40e   : > { %p1615_p8 = pneg %p1614_p7 }
 0x40f   : > { %p1621_p13 = por %p1620_p12, %p1619_p11 }
 0x411   : > { %p1622_p0 = pnand %p1621_p13, %p1615_p8 }
 0x413   : > { %1625 = shalt.err (!%p1622_p0)
}
 0x414   : > { %s1663_s14 = smov 64   ;;  %s1664_s16 = smov 4  }
 0x415   : > { %1508 = dma.vmem_to_hbm [thread:$0]  (%p1753_p5), %s2026_s26, 1024, %s2024_s29, %s2031_s13, %s1663_s14, %s1663_s14, %s1664_s16  }
 0x416 PF: > { %p1514_p1 = scmp.ge.s32.totalorder %s1660_s12, 2  ;;  %s1215_s22 = sand.u32 1, %s1648_s30  }
 0x417   : > { %s1216_s21 = scalar_lea.sflag [#allocation3], %s1215_s22 }
 0x418   : > { %p1511_p2 = pnand %p1514_p1, %p1757_p6 }
 0x41a   : > { %1643 = dma.done.wait (!%p1511_p2), %s1216_s21, 1024  }
 0x41b   : > { %1645 = vsyncadd (!%p1511_p2), %s1216_s21, 4294966272  ;;  %p19_p3 = scmp.ge.s32.totalorder %s1740_s15, 4   ;;  %s2084_s30 = smov %s1652_s10 }
 0x41c   : > { %s2085_s10 = smov %s1656_s11  ;;  %s2086_s11 = smov %s1751_s18 }
 0x41d   : > { %s2087_s12 = smov %s1740_s15  ;;  %21 = sbr.rel (!%p19_p3) target bundleno = 3 (0x3), region = 91 }
 0x424   :  { %1221 = vsyncpa [#allocation3], 1 }
 0x425   :  { %1223 = vsyncpa [#allocation3 + $0x1], 1 }

</bundles_post_ra>
